<compile_context>
chip_gen: v6e
topology: v6e:2x2x1
jax: 0.10.0
libtpu: 0.0.40
codegen_flags: <defaults>
</compile_context>

<pallas_src>
import functools

import jax
import jax.numpy as jnp
from jax.experimental import pallas as pl
from jax.experimental.pallas import tpu as pltpu


# ----------------------------- helpers -----------------------------

def _cdiv(a, b):
    return (a + b - 1) // b


def _round_up(a, b):
    return _cdiv(a, b) * b


def _num_tensorcores():
    """2 TensorCores per chip on v7x; 1 on v5e/v6e.  Best-effort detection."""
    try:
        kind = jax.devices()[0].device_kind.lower()
        return 2 if "v7" in kind else 1
    except Exception:  # pragma: no cover
        return 1


# ----------------------------- kernel ------------------------------

def dqn_kernel(x_ref, w1_ref, b1_ref, w2_ref, b2_ref, w3_ref, b3_ref, o_ref):
    x = x_ref[...]  # (TB, in_dim) bf16
    # Layer 1: Linear + ReLU (MXU matmul with f32 accumulation; bias/ReLU on VPU in f32)
    h1 = jnp.dot(x, w1_ref[...], preferred_element_type=jnp.float32) + b1_ref[...]
    h1 = jnp.maximum(h1, 0.0)
    # Layer 2: Linear + ReLU (only the dot inputs are narrowed back to bf16)
    h2 = jnp.dot(h1.astype(w2_ref.dtype), w2_ref[...],
                 preferred_element_type=jnp.float32) + b2_ref[...]
    h2 = jnp.maximum(h2, 0.0)
    # Layer 3: Linear (Q-values over 128 lane-dense, zero-padded outputs)
    out = jnp.dot(h2.astype(w3_ref.dtype), w3_ref[...],
                  preferred_element_type=jnp.float32) + b3_ref[...]
    # bf16 store: halves HBM writeback on the memory-bound path.
    o_ref[...] = out.astype(o_ref.dtype)


# -------------------------- param prep (one-time) --------------------------

def prepare_params(params, compute_dtype=jnp.bfloat16):
    """One-time prep: bf16 weights, f32 biases, hidden/output padded to 128 lanes.

    Run once per parameter set, outside the per-call hot path.
    """
    w1, b1, w2, b2, w3, b3 = params
    in_dim, hidden = w1.shape
    out_dim = w3.shape[1]
    hpad = _round_up(hidden, 128)
    opad = _round_up(max(out_dim, 128), 128)

    w1p = jnp.zeros((in_dim, hpad), compute_dtype).at[:, :hidden].set(w1.astype(compute_dtype))
    b1p = jnp.zeros((1, hpad), jnp.float32).at[:, :hidden].set(b1.astype(jnp.float32))
    w2p = jnp.zeros((hpad, hpad), compute_dtype).at[:hidden, :hidden].set(w2.astype(compute_dtype))
    b2p = jnp.zeros((1, hpad), jnp.float32).at[:, :hidden].set(b2.astype(jnp.float32))
    w3p = jnp.zeros((hpad, opad), compute_dtype).at[:hidden, :out_dim].set(w3.astype(compute_dtype))
    b3p = jnp.zeros((1, opad), jnp.float32).at[:, :out_dim].set(b3.astype(jnp.float32))
    return (w1p, b1p, w2p, b2p, w3p, b3p)


# ------------------------------ forward ------------------------------

@functools.partial(jax.jit, static_argnames=("out_dim", "tb", "min_pallas_batch"))
def dqn_forward(x, prepared, out_dim, *, tb=None, min_pallas_batch=256):
    """Forward pass.  `prepared` comes from prepare_params (padded, pre-cast)."""
    w1, b1, w2, b2, w3, b3 = prepared
    batch, in_dim = x.shape
    hpad = w1.shape[1]
    opad = w3.shape[1]

    # Small-batch bypass: pallas_call launch/DMA-setup overhead dominates for tiny
    # batches on every generation; let XLA fuse the three GEMMs instead.
    if batch < min_pallas_batch:
        xb = x.astype(w1.dtype)
        h1 = jnp.maximum(jnp.dot(xb, w1, preferred_element_type=jnp.float32) + b1, 0.0)
        h2 = jnp.maximum(jnp.dot(h1.astype(w2.dtype), w2,
                                 preferred_element_type=jnp.float32) + b2, 0.0)
        out = jnp.dot(h2.astype(w3.dtype), w3, preferred_element_type=jnp.float32) + b3
        return out[:, :out_dim]

    # ---- padding-aware tile selection (waste < one tile) ----
    b8 = _round_up(batch, 8)
    if tb is None:
        tb_max = 4096                       # amortizes ~0.35 us/step; fits 16 MiB VMEM on v5e
        num_tiles = max(1, _cdiv(b8, tb_max))
        ncores = _num_tensorcores()
        if ncores > 1 and b8 >= 512:        # v7x: give the parallel axis >=2 steps
            num_tiles = _round_up(num_tiles, ncores)
        tb = _round_up(_cdiv(b8, num_tiles), 8)
    b_pad = _round_up(b8, tb)

    xp = x.astype(w1.dtype)
    if b_pad != batch:
        xp = jnp.zeros((b_pad, in_dim), w1.dtype).at[:batch].set(xp)
    # TODO(synk): if profiling shows the x DMA exposed (in_dim=16 < 128 lanes), repack
    # x into a lane-dense (batch/8, 128) view in the wrapper and unpack in-kernel.

    grid = (b_pad // tb,)
    out = pl.pallas_call(
        dqn_kernel,
        out_shape=jax.ShapeDtypeStruct((b_pad, opad), jnp.bfloat16),
        grid=grid,
        in_specs=[
            pl.BlockSpec((tb, in_dim), lambda i: (i, 0)),   # x tile streams per grid step
            pl.BlockSpec((in_dim, hpad), lambda i: (0, 0)),  # w1 (VMEM-resident)
            pl.BlockSpec((1, hpad), lambda i: (0, 0)),       # b1
            pl.BlockSpec((hpad, hpad), lambda i: (0, 0)),    # w2
            pl.BlockSpec((1, hpad), lambda i: (0, 0)),       # b2
            pl.BlockSpec((hpad, opad), lambda i: (0, 0)),    # w3 (lane-padded)
            pl.BlockSpec((1, opad), lambda i: (0, 0)),       # b3 (lane-padded)
        ],
        out_specs=pl.BlockSpec((tb, opad), lambda i: (i, 0)),
        compiler_params=pltpu.CompilerParams(
            dimension_semantics=("parallel",),               # 2-TC sharding on v7x
        ),
    )(xp, w1, b1, w2, b2, w3, b3)

    # Tiny slice; cast back to f32 in the wrapper (cheap) while the big slab stays bf16.
    return out[:batch, :out_dim].astype(jnp.float32)


# ------------------------------ reference & demo ------------------------------

def init_params(key, input_dim, output_dim, hidden=64):
    """Deterministic synthetic init (shapes match nn.Linear, stored pre-transposed)."""
    k1, k2, k3, k4, k5, k6 = jax.random.split(key, 6)
    w1 = jax.random.normal(k1, (input_dim, hidden), jnp.float32) * 0.1
    b1 = jax.random.normal(k2, (1, hidden), jnp.float32) * 0.1
    w2 = jax.random.normal(k3, (hidden, hidden), jnp.float32) * 0.1
    b2 = jax.random.normal(k4, (1, hidden), jnp.float32) * 0.1
    w3 = jax.random.normal(k5, (hidden, output_dim), jnp.float32) * 0.1
    b3 = jax.random.normal(k6, (1, output_dim), jnp.float32) * 0.1
    return (w1, b1, w2, b2, w3, b3)


def dqn_reference(x, params):
    """Pure-JAX f32 reference matching PyTorch semantics."""
    w1, b1, w2, b2, w3, b3 = params
    h1 = jnp.maximum(x @ w1 + b1, 0.0)
    h2 = jnp.maximum(h1 @ w2 + b2, 0.0)
    return h2 @ w3 + b3


if __name__ == "__main__":
    key = jax.random.PRNGKey(0)
    k_param, k_x = jax.random.split(key)

    batch = 32       # small demo batch (kernel also scales to 2048-4096 row tiles)
    input_dim = 16   # small observation vector
    output_dim = 4   # number of discrete actions

    params = init_params(k_param, input_dim, output_dim)
    prepared = prepare_params(params)  # one-time: bf16 cast + 128-lane padding
    x = jax.random.normal(k_x, (batch, input_dim), jnp.float32)

    # Force the Pallas path (min_pallas_batch=0) so the kernel is actually exercised.
    out = dqn_forward(x, prepared, output_dim, min_pallas_batch=0)
    out = jax.block_until_ready(out)

    ref = dqn_reference(x, params)
    assert out.shape == (batch, output_dim)
    # bf16 MXU inputs + bf16 output slab vs f32 reference -> loosened tolerance.
    assert jnp.allclose(out, ref, atol=5e-2, rtol=5e-2), "mismatch vs JAX reference"

    print("KERNEL_OK")
</pallas_src>

<mosaic_0001>
module attributes {stable_mosaic.version = 11 : i64} {
  func.func @dqn_kernel(%arg0: i32, %arg1: memref<32x16xbf16, #tpu.memory_space<vmem>>, %arg2: memref<16x128xbf16, #tpu.memory_space<vmem>>, %arg3: memref<1x128xf32, #tpu.memory_space<vmem>>, %arg4: memref<128x128xbf16, #tpu.memory_space<vmem>>, %arg5: memref<1x128xf32, #tpu.memory_space<vmem>>, %arg6: memref<128x128xbf16, #tpu.memory_space<vmem>>, %arg7: memref<1x128xf32, #tpu.memory_space<vmem>>, %arg8: memref<32x128xbf16, #tpu.memory_space<vmem>>) attributes {dimension_semantics = [#tpu.dimension_semantics<parallel>], iteration_bounds = array<i64: 1>, scalar_prefetch = 0 : i64, scratch_operands = 0 : i64, tpu.core_type = #tpu.core_type<tc>, window_params = [{transform_indices = @transform_0, window_bounds = array<i64: 32, 16>}, {pipeline_mode = #tpu.pipeline_mode<synchronous>, transform_indices = @transform_1, window_bounds = array<i64: 16, 128>}, {pipeline_mode = #tpu.pipeline_mode<synchronous>, transform_indices = @transform_2, window_bounds = array<i64: 1, 128>}, {pipeline_mode = #tpu.pipeline_mode<synchronous>, transform_indices = @transform_3, window_bounds = array<i64: 128, 128>}, {pipeline_mode = #tpu.pipeline_mode<synchronous>, transform_indices = @transform_4, window_bounds = array<i64: 1, 128>}, {pipeline_mode = #tpu.pipeline_mode<synchronous>, transform_indices = @transform_5, window_bounds = array<i64: 128, 128>}, {pipeline_mode = #tpu.pipeline_mode<synchronous>, transform_indices = @transform_6, window_bounds = array<i64: 1, 128>}, {transform_indices = @transform_7, window_bounds = array<i64: 32, 128>}]} {
    %c0 = arith.constant 0 : index
    %c0_0 = arith.constant 0 : index
    %0 = vector.load %arg1[%c0, %c0_0] : memref<32x16xbf16, #tpu.memory_space<vmem>>, vector<32x16xbf16>
    %c0_1 = arith.constant 0 : index
    %c0_2 = arith.constant 0 : index
    %1 = vector.load %arg2[%c0_1, %c0_2] : memref<16x128xbf16, #tpu.memory_space<vmem>>, vector<16x128xbf16>
    %cst = arith.constant dense<0.000000e+00> : vector<32x128xf32>
    %2 = tpu.matmul %0, %1, %cst {dimension_numbers = #tpu.dot_dimension_numbers<[1], [0], [0], [1], [0, 0, 1, 1], [], []>} : vector<32x16xbf16>, vector<16x128xbf16>, vector<32x128xf32> -> vector<32x128xf32>
    %c0_3 = arith.constant 0 : index
    %c0_4 = arith.constant 0 : index
    %3 = vector.load %arg3[%c0_3, %c0_4] : memref<1x128xf32, #tpu.memory_space<vmem>>, vector<1x128xf32>
    %4 = vector.broadcast %3 : vector<1x128xf32> to vector<32x128xf32>
    %5 = arith.addf %2, %4 : vector<32x128xf32>
    %cst_5 = arith.constant 0.000000e+00 : f32
    %6 = vector.broadcast %cst_5 : f32 to vector<32x128xf32>
    %7 = arith.maximumf %5, %6 : vector<32x128xf32>
    %8 = arith.truncf %7 : vector<32x128xf32> to vector<32x128xbf16>
    %c0_6 = arith.constant 0 : index
    %c0_7 = arith.constant 0 : index
    %9 = vector.load %arg4[%c0_6, %c0_7] : memref<128x128xbf16, #tpu.memory_space<vmem>>, vector<128x128xbf16>
    %cst_8 = arith.constant dense<0.000000e+00> : vector<32x128xf32>
    %10 = tpu.matmul %8, %9, %cst_8 {dimension_numbers = #tpu.dot_dimension_numbers<[1], [0], [0], [1], [0, 0, 1, 1], [], []>} : vector<32x128xbf16>, vector<128x128xbf16>, vector<32x128xf32> -> vector<32x128xf32>
    %c0_9 = arith.constant 0 : index
    %c0_10 = arith.constant 0 : index
    %11 = vector.load %arg5[%c0_9, %c0_10] : memref<1x128xf32, #tpu.memory_space<vmem>>, vector<1x128xf32>
    %12 = vector.broadcast %11 : vector<1x128xf32> to vector<32x128xf32>
    %13 = arith.addf %10, %12 : vector<32x128xf32>
    %cst_11 = arith.constant 0.000000e+00 : f32
    %14 = vector.broadcast %cst_11 : f32 to vector<32x128xf32>
    %15 = arith.maximumf %13, %14 : vector<32x128xf32>
    %16 = arith.truncf %15 : vector<32x128xf32> to vector<32x128xbf16>
    %c0_12 = arith.constant 0 : index
    %c0_13 = arith.constant 0 : index
    %17 = vector.load %arg6[%c0_12, %c0_13] : memref<128x128xbf16, #tpu.memory_space<vmem>>, vector<128x128xbf16>
    %cst_14 = arith.constant dense<0.000000e+00> : vector<32x128xf32>
    %18 = tpu.matmul %16, %17, %cst_14 {dimension_numbers = #tpu.dot_dimension_numbers<[1], [0], [0], [1], [0, 0, 1, 1], [], []>} : vector<32x128xbf16>, vector<128x128xbf16>, vector<32x128xf32> -> vector<32x128xf32>
    %c0_15 = arith.constant 0 : index
    %c0_16 = arith.constant 0 : index
    %19 = vector.load %arg7[%c0_15, %c0_16] : memref<1x128xf32, #tpu.memory_space<vmem>>, vector<1x128xf32>
    %20 = vector.broadcast %19 : vector<1x128xf32> to vector<32x128xf32>
    %21 = arith.addf %18, %20 : vector<32x128xf32>
    %22 = arith.truncf %21 : vector<32x128xf32> to vector<32x128xbf16>
    %c0_17 = arith.constant 0 : index
    %c0_18 = arith.constant 0 : index
    %23 = vector.load %arg8[%c0_17, %c0_18] : memref<32x128xbf16, #tpu.memory_space<vmem>>, vector<32x128xbf16>
    tpu.vector_store %arg8[%c0_17, %c0_18], %22 {strides = array<i32>} : memref<32x128xbf16, #tpu.memory_space<vmem>>, vector<32x128xbf16>,
    return
  }
  func.func @transform_0(%arg0: i32) -> (i32, i32) {
    %c0_i32 = arith.constant 0 : i32
    %c0_i32_0 = arith.constant 0 : i32
    return %arg0, %c0_i32 : i32, i32
  }
  func.func @transform_1(%arg0: i32) -> (i32, i32) {
    %c0_i32 = arith.constant 0 : i32
    %c0_i32_0 = arith.constant 0 : i32
    %c0_i32_1 = arith.constant 0 : i32
    return %c0_i32, %c0_i32_0 : i32, i32
  }
  func.func @transform_2(%arg0: i32) -> (i32, i32) {
    %c0_i32 = arith.constant 0 : i32
    %c0_i32_0 = arith.constant 0 : i32
    %c0_i32_1 = arith.constant 0 : i32
    return %c0_i32, %c0_i32_0 : i32, i32
  }
  func.func @transform_3(%arg0: i32) -> (i32, i32) {
    %c0_i32 = arith.constant 0 : i32
    %c0_i32_0 = arith.constant 0 : i32
    %c0_i32_1 = arith.constant 0 : i32
    return %c0_i32, %c0_i32_0 : i32, i32
  }
  func.func @transform_4(%arg0: i32) -> (i32, i32) {
    %c0_i32 = arith.constant 0 : i32
    %c0_i32_0 = arith.constant 0 : i32
    %c0_i32_1 = arith.constant 0 : i32
    return %c0_i32, %c0_i32_0 : i32, i32
  }
  func.func @transform_5(%arg0: i32) -> (i32, i32) {
    %c0_i32 = arith.constant 0 : i32
    %c0_i32_0 = arith.constant 0 : i32
    %c0_i32_1 = arith.constant 0 : i32
    return %c0_i32, %c0_i32_0 : i32, i32
  }
  func.func @transform_6(%arg0: i32) -> (i32, i32) {
    %c0_i32 = arith.constant 0 : i32
    %c0_i32_0 = arith.constant 0 : i32
    %c0_i32_1 = arith.constant 0 : i32
    return %c0_i32, %c0_i32_0 : i32, i32
  }
  func.func @transform_7(%arg0: i32) -> (i32, i32) {
    %c0_i32 = arith.constant 0 : i32
    %c0_i32_0 = arith.constant 0 : i32
    return %arg0, %c0_i32 : i32, i32
  }
}

</mosaic_0001>

<bundles_post_ra>
// kernel: dqn_forward.1
= control target key start
LH: loop header
LB: loop body
LE: loop exit
PB: predicated region body
PF: predicated region fallthrough
CT: control target
= control target key end

     0   :  { %12 = vsyncpa [#allocation3], 0  ;;  %s671_s0 = inlined_call_operand.vmem [shape: bf16[32,16], index: 0, kind: input, shape index: {}]   ;;  %s672_s1 = inlined_call_operand.vmem [shape: bf16[16,128], index: 1, kind: input, shape index: {}]   ;;  %s673_s2 = inlined_call_operand.vmem [shape: f32[1,128], index: 2, kind: input, shape index: {}]   ;;  %s674_s3 = inlined_call_operand.hbm [shape: bf16[128,128], index: 3, kind: input, shape index: {}]   ;;  %s675_s4 = inlined_call_operand.vmem [shape: f32[1,128], index: 4, kind: input, shape index: {}]   ;;  %s676_s5 = inlined_call_operand.hbm [shape: bf16[128,128], index: 5, kind: input, shape index: {}]   ;;  %s677_s6 = inlined_call_operand.vmem [shape: f32[1,128], index: 6, kind: input, shape index: {}]   ;;  %s678_s7 = inlined_call_operand.vmem [shape: bf16[32,128], index: 7, kind: output, shape index: {}]  }
   0x1   :  { %13 = vsyncpa [#allocation5], 0  ;;  %s597_s24 = smov [#allocation2]  }
   0x2   :  { %s25_s25 = sshll.u32 %s597_s24, 4  ;;  %s26_s25 = int_to_ptr.vmem [resolvable:$true] %s25_s25 }
   0x3   :  { %s561_s26 = scalar_lea.vmem %s26_s25, 1024  ;;  %p566_p1 = scmp.lt.s32.totalorder %s26_s25, %s26_s25 }
   0x4   :  { %p562_p0 = scmp.ne.s32.totalorder %s26_s25, %s561_s26  ;;  %p567_p2 = scmp.lt.s32.totalorder %s561_s26, %s561_s26 }
   0x6   :  { %p568_p3 = por %p567_p2, %p566_p1 }
   0x8   :  { %p569_p4 = pnand %p568_p3, %p562_p0 }
   0xa   :  { %572 = shalt.err (!%p569_p4)
}
   0xb   :  { %s598_s27 = smov 64   ;;  %s599_s28 = smov 4  }
   0xc   :  { %31 = dma.hbm_to_vmem [thread:$0]  %s674_s3, 1024, %s26_s25, [#allocation3], %s598_s27, %s598_s27, %s599_s28  }
   0xd   :  { %s600_s8 = smov [#allocation4]  }
   0xe   :  { %s39_s9 = sshll.u32 %s600_s8, 4  ;;  %s40_s9 = int_to_ptr.vmem [resolvable:$true] %s39_s9 }
   0xf   :  { %s581_s10 = scalar_lea.vmem %s40_s9, 1024  ;;  %p586_p6 = scmp.lt.s32.totalorder %s40_s9, %s40_s9 }
  0x10   :  { %p582_p5 = scmp.ne.s32.totalorder %s40_s9, %s581_s10  ;;  %p587_p7 = scmp.lt.s32.totalorder %s581_s10, %s581_s10 }
  0x12   :  { %p588_p8 = por %p587_p7, %p586_p6 }
  0x14   :  { %p589_p9 = pnand %p588_p8, %p582_p5 }
  0x16   :  { %592 = shalt.err (!%p589_p9)
}
  0x17   :  { %45 = dma.hbm_to_vmem [thread:$0]  %s676_s5, 1024, %s40_s9, [#allocation5], %s598_s27, %s598_s27, %s599_s28  }
  0x18   :  { %593 = dma.done.wait [#allocation3], 1024  }
  0x19   :  { %594 = vsyncadd [#allocation3], 4294966272 }
  0x1a   :  { %595 = dma.done.wait [#allocation5], 1024  }
  0x1b   :  { %596 = vsyncadd [#allocation5], 4294966272  ;;  %v534_v0 = vld [vmem:[%s672_s1] sm:$0xff]   ;;  %vm84_vm0 = vcmask 130048   ;;  %v536_v2 = vld [vmem:[%s671_s0 + $0x8] sm:$0xff]  }
  0x1c   :  { %v535_v1 = vld [vmem:[%s671_s0] sm:$0xff]   ;;  %484 = vmatprep.subr.bf16.mxu0 %v534_v0  ;;  %v537_v3 = vld [vmem:[#allocation2 + $0x38] sm:$0xff]   ;;  %v538_v4 = vld [vmem:[#allocation2 + $0x30] sm:$0xff]  }
  0x1d   :  { %485 = vmatpush3.bf16.msra.mxu0 %v534_v0  ;;  %486 = vmatprep.mubr.msk.bf16.mxu0 %vm84_vm0, %v535_v1  ;;  %v539_v5 = vld [vmem:[#allocation2 + $0x28] sm:$0xff]   ;;  %v540_v6 = vld [vmem:[#allocation2 + $0x20] sm:$0xff]   ;;  %v541_v7 = vld [vmem:[#allocation2 + $0x18] sm:$0xff]  }
  0x1e   :  { %490 = vmatprep.subr.bf16.mxu1 %v537_v3  ;;  %v542_v8 = vld [vmem:[#allocation2 + $0x10] sm:$0xff]   ;;  %v543_v9 = vld [vmem:[#allocation2 + $0x8] sm:$0xff]   ;;  %v544_v10 = vld [vmem:[#allocation2] sm:$0xff]  }
  0x1f   :  { %491 = vmatpush3.bf16.msra.mxu1 %v537_v3  ;;  %v545_v11 = vld [vmem:[#allocation4 + $0x38] sm:$0xff]   ;;  %v546_v12 = vld [vmem:[#allocation4 + $0x30] sm:$0xff]   ;;  %v547_v13 = vld [vmem:[#allocation4 + $0x28] sm:$0xff]  }
  0x20   :  { %487 = vmatmul.mubr.msk.bf16.vlgmr.msra.gmra.mxu0 %vm84_vm0, %v536_v2  ;;  %492 = vmatprep.subr.bf16.mxu1 %v538_v4  ;;  %v548_v14 = vld [vmem:[#allocation4 + $0x20] sm:$0xff]   ;;  %v549_v15 = vld [vmem:[#allocation4 + $0x18] sm:$0xff]   ;;  %v550_v31 = vld [vmem:[#allocation4 + $0x10] sm:$0xff]  }
  0x21   :  { %510 = vmatprep.subr.bf16.mxu0 %v545_v11  ;;  %v418_v18 = vld [vmem:[%s673_s2] ss:$0 sm:$0xff]  ;;  %v551_v32 = vld [vmem:[#allocation4 + $0x8] sm:$0xff]  }
  0x22   :  { %511 = vmatpush3.bf16.msra.mxu0 %v545_v11  ;;  %v552_v33 = vld [vmem:[#allocation4] sm:$0xff]  }
  0x23   :  { %493 = vmatpush3.bf16.msra.mxu1 %v538_v4  ;;  %512 = vmatprep.subr.bf16.mxu0 %v546_v12  ;;  %v424_v36 = vld [vmem:[%s675_s4] ss:$0 sm:$0xff] }
  0x24   :  { %494 = vmatprep.subr.bf16.mxu1 %v539_v5  ;;  %v433_v50 = vld [vmem:[%s677_s6] ss:$0 sm:$0xff] }
  0x26   :  { %513 = vmatpush3.bf16.msra.mxu0 %v546_v12 }
  0x27   :  { %495 = vmatpush3.bf16.msra.mxu1 %v539_v5  ;;  %514 = vmatprep.subr.bf16.mxu0 %v547_v13 }
  0x28   :  { %496 = vmatprep.subr.bf16.mxu1 %v540_v6 }
  0x2a   :  { %515 = vmatpush3.bf16.msra.mxu0 %v547_v13 }
  0x2b   :  { %497 = vmatpush3.bf16.msra.mxu1 %v540_v6  ;;  %516 = vmatprep.subr.bf16.mxu0 %v548_v14 }
  0x2c   :  { %498 = vmatprep.subr.bf16.mxu1 %v541_v7 }
  0x2e   :  { %517 = vmatpush3.bf16.msra.mxu0 %v548_v14 }
  0x2f   :  { %499 = vmatpush3.bf16.msra.mxu1 %v541_v7  ;;  %518 = vmatprep.subr.bf16.mxu0 %v549_v15 }
  0x30   :  { %500 = vmatprep.subr.bf16.mxu1 %v542_v8 }
  0x32   :  { %519 = vmatpush3.bf16.msra.mxu0 %v549_v15 }
  0x33   :  { %501 = vmatpush3.bf16.msra.mxu1 %v542_v8  ;;  %520 = vmatprep.subr.bf16.mxu0 %v550_v31 }
  0x34   :  { %502 = vmatprep.subr.bf16.mxu1 %v543_v9 }
  0x36   :  { %521 = vmatpush3.bf16.msra.mxu0 %v550_v31 }
  0x37   :  { %503 = vmatpush3.bf16.msra.mxu1 %v543_v9  ;;  %522 = vmatprep.subr.bf16.mxu0 %v551_v32 }
  0x38   :  { %504 = vmatprep.subr.bf16.mxu1 %v544_v10 }
  0x3a   :  { %523 = vmatpush3.bf16.msra.mxu0 %v551_v32 }
  0x3b   :  { %505 = vmatpush3.bf16.msra.mxu1 %v544_v10  ;;  %524 = vmatprep.subr.bf16.mxu0 %v552_v33 }
  0x3e   :  { %525 = vmatpush3.bf16.msra.mxu0 %v552_v33 }
  0xe0   :  { %v488_v16 = vpop.f32.mrf.mxu0 }
  0xe1   :  { %v134_v22 = vadd.f32 %v488_v16, %v418_v18 }
  0xe2   :  { %v125_v17 = vpop.f32.mrf.mxu0 }
  0xe3   :  { %v126_v20 = vadd.f32 %v418_v18, %v125_v17  ;;  %v142_v28 = vmax.f32 %v134_v22, 0.0 }
  0xe4   :  { %v489_v19 = vpop.f32.mrf.mxu0 }
  0xe5   :  { %v137_v21 = vadd.f32 %v489_v19, %v418_v18  ;;  %v140_v26 = vmax.f32 %v126_v20, 0.0 }
  0xe6   :  { %v128_v23 = vpop.f32.mrf.mxu0 }
  0xe7   :  { %v129_v24 = vadd.f32 %v418_v18, %v128_v23  ;;  %v143_v25 = vmax.f32 %v137_v21, 0.0 }
  0xe9   :  { %v141_v27 = vmax.f32 %v129_v24, 0.0  ;;  %v145_v30 = vpack.c.bf16 %v143_v25, %v142_v28 }
  0xeb   :  { %v144_v29 = vpack.c.bf16 %v141_v27, %v140_v26 }
  0xed   :  { %506 = vmatprep.mubr.bf16.mxu1 %v144_v29 }
  0xee   :  { %507 = vmatmul.mubr.bf16.vlgmr.msra.gmra.mxu1 %v145_v30 }
 0x1ae   :  { %v508_v34 = vpop.f32.mrf.mxu1 }
 0x1af   :  { %v260_v40 = vadd.f32 %v508_v34, %v424_v36 }
 0x1b0   :  { %v251_v35 = vpop.f32.mrf.mxu1 }
 0x1b1   :  { %v252_v38 = vadd.f32 %v424_v36, %v251_v35  ;;  %v268_v46 = vmax.f32 %v260_v40, 0.0 }
 0x1b2   :  { %v509_v37 = vpop.f32.mrf.mxu1 }
 0x1b3   :  { %v263_v39 = vadd.f32 %v509_v37, %v424_v36  ;;  %v266_v44 = vmax.f32 %v252_v38, 0.0 }
 0x1b4   :  { %v254_v41 = vpop.f32.mrf.mxu1 }
 0x1b5   :  { %v255_v42 = vadd.f32 %v424_v36, %v254_v41  ;;  %v269_v43 = vmax.f32 %v263_v39, 0.0 }
 0x1b7   :  { %v267_v45 = vmax.f32 %v255_v42, 0.0  ;;  %v271_v48 = vpack.c.bf16 %v269_v43, %v268_v46 }
 0x1b9   :  { %v270_v47 = vpack.c.bf16 %v267_v45, %v266_v44 }
 0x1bb   :  { %526 = vmatprep.mubr.bf16.mxu0 %v270_v47 }
 0x1bc   :  { %527 = vmatmul.mubr.bf16.vlgmr.msra.gmra.mxu0 %v271_v48 }
 0x27c   :  { %v528_v49 = vpop.f32.mrf.mxu0 }
 0x27d   :  { %v386_v53 = vadd.f32 %v528_v49, %v433_v50 }
 0x27e   :  { %v377_v51 = vpop.f32.mrf.mxu0 }
 0x27f   :  { %v378_v56 = vadd.f32 %v433_v50, %v377_v51 }
 0x280   :  { %v529_v52 = vpop.f32.mrf.mxu0 }
 0x281   :  { %v389_v54 = vadd.f32 %v529_v52, %v433_v50 }
 0x282   :  { %v380_v55 = vpop.f32.mrf.mxu0 }
 0x283   :  { %v458_v57 = vpack.c.bf16 %v389_v54, %v386_v53  ;;  %v381_v58 = vadd.f32 %v433_v50, %v380_v55 }
 0x285   :  { %460 = vst [vmem:[%s678_s7 + $0x8] sm:$0xff] %v458_v57   ;;  %v453_v59 = vpack.c.bf16 %v381_v58, %v378_v56 }
 0x287   :  { %454 = vst [vmem:[%s678_s7] sm:$0xff] %v453_v59  }
 0x288   :  { %416 = vsyncpa [#allocation3], 1 }
 0x289   :  { %417 = vsyncpa [#allocation5], 1 }

</bundles_post_ra>
